<compile_context>
chip_gen: v7x
topology: tpu7x:2x2x1
jax: 0.10.0
libtpu: 0.0.40
codegen_flags: <defaults>
</compile_context>

<pallas_src>
import jax
import jax.numpy as jnp
from jax.experimental import pallas as pl
from jax.experimental.pallas import tpu as pltpu

_LANES = 128                          # lane width (multiple of 128 -> unmasked vst)
_TILE_BYTES = 4 * 1024 * 1024         # target bytes per array per grid step
_VMEM_LIMIT_BYTES = 40 * 1024 * 1024  # 24 MiB live + headroom; > v5e 16 MiB default,
                                      # < v7x 64 MiB physical VMEM
_PALLAS_MIN_BYTES = 512 * 1024        # below this per array, fused XLA wins


def _combine_kernel(a_ref, b_ref, x_ref, y_ref, o_ref):
    # a_ref, b_ref: (1,) f32 scalars in SMEM.
    # x_ref, y_ref, o_ref: (block_rows, _LANES) tiles in VMEM.
    a = a_ref[0]
    b = b_ref[0]
    acc = a * x_ref[...].astype(jnp.float32) + b * y_ref[...].astype(jnp.float32)
    o_ref[...] = acc.astype(o_ref.dtype)


def _combine_pallas(a, b, x, y):
    """Always uses the Pallas kernel. x, y: same shape & (floating) dtype."""
    assert x.shape == y.shape and x.dtype == y.dtype
    a = jnp.asarray(a, jnp.float32).reshape(1)
    b = jnp.asarray(b, jnp.float32).reshape(1)

    total = x.size
    itemsize = jnp.dtype(x.dtype).itemsize

    # dtype-aware rows so each grid step moves ~_TILE_BYTES per array
    # (bf16 gets 2x the rows of f32).  Always a multiple of 8.
    tile_rows = max(8, (_TILE_BYTES // (_LANES * itemsize)) // 8 * 8)

    x1 = x.reshape(-1)
    y1 = y.reshape(-1)

    # Pad only up to the next multiple of the 128-lane width (< 128 elements).
    # The partial last *block* is handled by the cdiv grid + Pallas masking,
    # so lane-aligned sizes need no padding and no output slice at all.
    rem = total % _LANES
    padded_total = total if rem == 0 else total + (_LANES - rem)
    if padded_total != total:
        # TODO(synk): ragged (non multiple-of-128) sizes still cost one
        # pad/slice copy; a 1-D block layout could remove even that.
        x1 = jnp.pad(x1, (0, padded_total - total))
        y1 = jnp.pad(y1, (0, padded_total - total))

    rows = padded_total // _LANES
    x2 = x1.reshape(rows, _LANES)
    y2 = y1.reshape(rows, _LANES)

    # Block rows: full extent for small arrays (allowed even if not a multiple
    # of 8), otherwise the multiple-of-8 tile size; cdiv grid masks the tail.
    block_rows = rows if rows < tile_rows else tile_rows
    grid = (pl.cdiv(rows, block_rows),)

    out2 = pl.pallas_call(
        _combine_kernel,
        out_shape=jax.ShapeDtypeStruct((rows, _LANES), x.dtype),
        grid=grid,
        in_specs=[
            pl.BlockSpec(memory_space=pltpu.SMEM),                   # a (scalar)
            pl.BlockSpec(memory_space=pltpu.SMEM),                   # b (scalar)
            pl.BlockSpec((block_rows, _LANES), lambda i: (i, 0)),    # x tile
            pl.BlockSpec((block_rows, _LANES), lambda i: (i, 0)),    # y tile
        ],
        out_specs=pl.BlockSpec((block_rows, _LANES), lambda i: (i, 0)),
        compiler_params=pltpu.CompilerParams(
            dimension_semantics=("parallel",),       # lets multi-TC parts shard
            vmem_limit_bytes=_VMEM_LIMIT_BYTES,
        ),
    )(a, b, x2, y2)

    out_flat = out2.reshape(-1)
    if padded_total != total:
        out_flat = out_flat[:total]
    return out_flat.reshape(x.shape)


def _combine_xla(a, b, x, y):
    a = jnp.asarray(a, jnp.float32).reshape(1)
    b = jnp.asarray(b, jnp.float32).reshape(1)
    out = a[0] * x.astype(jnp.float32) + b[0] * y.astype(jnp.float32)
    return out.astype(x.dtype)


def _combine(a, b, x, y):
    assert x.shape == y.shape and x.dtype == y.dtype
    # Overhead-dominated / non-float regimes: let XLA fuse the elementwise op.
    if (x.size == 0
            or not jnp.issubdtype(x.dtype, jnp.floating)
            or x.size * jnp.dtype(x.dtype).itemsize < _PALLAS_MIN_BYTES):
        return _combine_xla(a, b, x, y)
    return _combine_pallas(a, b, x, y)


# Public entry point, jitted so reshapes/pads and the pallas_call compile into
# a single program (no per-op dispatch).
combine_layer = jax.jit(_combine)


if __name__ == "__main__":
    key = jax.random.PRNGKey(0)
    ka, kb, kx, ky, kx2, ky2, kx3, ky3 = jax.random.split(key, 8)

    # Parameter init mimics torch.rand(1): uniform [0, 1).
    a = jax.random.uniform(ka, (1,), dtype=jnp.float32)
    b = jax.random.uniform(kb, (1,), dtype=jnp.float32)

    def ref_fn(x, y, out_dtype):
        r = a[0] * x.astype(jnp.float32) + b[0] * y.astype(jnp.float32)
        return r.astype(out_dtype)

    combine_pallas_jit = jax.jit(_combine_pallas)

    # 1) Small NCHW inputs consistent with the module, pushed through the
    #    Pallas kernel directly (grid=(1,), full-extent block).
    x_s = jax.random.normal(kx, (2, 4, 16, 16), dtype=jnp.float32)
    y_s = jax.random.normal(ky, (2, 4, 16, 16), dtype=jnp.float32)
    out_s = jax.block_until_ready(combine_pallas_jit(a, b, x_s, y_s))
    assert out_s.shape == x_s.shape and out_s.dtype == x_s.dtype
    assert jnp.allclose(out_s, ref_fn(x_s, y_s, x_s.dtype), atol=1e-6, rtol=1e-6)

    # 2) Same small inputs through the public dispatcher (XLA fallback path).
    out_d = jax.block_until_ready(combine_layer(a, b, x_s, y_s))
    assert jnp.allclose(out_d, ref_fn(x_s, y_s, x_s.dtype), atol=1e-6, rtol=1e-6)

    # 3) Lane-aligned multi-block input (1,073,280 elems -> 8385 rows):
    #    grid of 2 blocks with a masked partial last block, no pad, no slice.
    x_l = jax.random.normal(kx2, (8, 8, 130, 129), dtype=jnp.float32)
    y_l = jax.random.normal(ky2, (8, 8, 130, 129), dtype=jnp.float32)
    out_l = jax.block_until_ready(combine_layer(a, b, x_l, y_l))
    assert out_l.shape == x_l.shape
    assert jnp.allclose(out_l, ref_fn(x_l, y_l, x_l.dtype), atol=1e-6, rtol=1e-6)

    # 4) Ragged element count (not a multiple of 128): exercises the small
    #    (<128 elem) pad + output-slice path.
    x_r = jax.random.normal(kx3, (4, 8, 63, 129), dtype=jnp.float32)
    y_r = jax.random.normal(ky3, (4, 8, 63, 129), dtype=jnp.float32)
    out_r = jax.block_until_ready(combine_layer(a, b, x_r, y_r))
    assert out_r.shape == x_r.shape
    assert jnp.allclose(out_r, ref_fn(x_r, y_r, x_r.dtype), atol=1e-6, rtol=1e-6)

    # 5) bf16 inputs: dtype-aware tile rows + in-kernel f32 compute / bf16 store.
    x_b = x_l.astype(jnp.bfloat16)
    y_b = y_l.astype(jnp.bfloat16)
    out_b = jax.block_until_ready(combine_layer(a, b, x_b, y_b))
    assert out_b.dtype == jnp.bfloat16
    assert jnp.allclose(out_b.astype(jnp.float32),
                        ref_fn(x_b, y_b, jnp.bfloat16).astype(jnp.float32),
                        atol=2e-2, rtol=2e-2)

    print("KERNEL_OK")
</pallas_src>

<mosaic_0001>
module attributes {stable_mosaic.version = 11 : i64} {
  func.func @_combine_kernel(%arg0: i32, %arg1: memref<1xf32, #tpu.memory_space<smem>>, %arg2: memref<1xf32, #tpu.memory_space<smem>>, %arg3: memref<16x128xf32, #tpu.memory_space<vmem>>, %arg4: memref<16x128xf32, #tpu.memory_space<vmem>>, %arg5: memref<16x128xf32, #tpu.memory_space<vmem>>) attributes {dimension_semantics = [#tpu.dimension_semantics<parallel>], iteration_bounds = array<i64: 1>, scalar_prefetch = 0 : i64, scratch_operands = 0 : i64, tpu.core_type = #tpu.core_type<tc>, window_params = [{transform_indices = @transform_0, window_bounds = array<i64: 1>}, {transform_indices = @transform_1, window_bounds = array<i64: 1>}, {transform_indices = @transform_2, window_bounds = array<i64: 16, 128>}, {transform_indices = @transform_3, window_bounds = array<i64: 16, 128>}, {transform_indices = @transform_4, window_bounds = array<i64: 16, 128>}]} {
    %c0 = arith.constant 0 : index
    %0 = memref.load %arg1[%c0] : memref<1xf32, #tpu.memory_space<smem>>
    %c0_0 = arith.constant 0 : index
    %1 = memref.load %arg2[%c0_0] : memref<1xf32, #tpu.memory_space<smem>>
    %c0_1 = arith.constant 0 : index
    %c0_2 = arith.constant 0 : index
    %2 = vector.load %arg3[%c0_1, %c0_2] : memref<16x128xf32, #tpu.memory_space<vmem>>, vector<16x128xf32>
    %3 = vector.broadcast %0 : f32 to vector<16x128xf32>
    %4 = arith.mulf %3, %2 : vector<16x128xf32>
    %c0_3 = arith.constant 0 : index
    %c0_4 = arith.constant 0 : index
    %5 = vector.load %arg4[%c0_3, %c0_4] : memref<16x128xf32, #tpu.memory_space<vmem>>, vector<16x128xf32>
    %6 = vector.broadcast %1 : f32 to vector<16x128xf32>
    %7 = arith.mulf %6, %5 : vector<16x128xf32>
    %8 = arith.addf %4, %7 : vector<16x128xf32>
    %c0_5 = arith.constant 0 : index
    %c0_6 = arith.constant 0 : index
    %9 = vector.load %arg5[%c0_5, %c0_6] : memref<16x128xf32, #tpu.memory_space<vmem>>, vector<16x128xf32>
    tpu.vector_store %arg5[%c0_5, %c0_6], %8 {strides = array<i32>} : memref<16x128xf32, #tpu.memory_space<vmem>>, vector<16x128xf32>,
    return
  }
  func.func @transform_0(%arg0: i32) -> i32 {
    %c0_i32 = arith.constant 0 : i32
    %c0_i32_0 = arith.constant 0 : i32
    return %c0_i32 : i32
  }
  func.func @transform_1(%arg0: i32) -> i32 {
    %c0_i32 = arith.constant 0 : i32
    %c0_i32_0 = arith.constant 0 : i32
    return %c0_i32 : i32
  }
  func.func @transform_2(%arg0: i32) -> (i32, i32) {
    %c0_i32 = arith.constant 0 : i32
    %c0_i32_0 = arith.constant 0 : i32
    return %arg0, %c0_i32 : i32, i32
  }
  func.func @transform_3(%arg0: i32) -> (i32, i32) {
    %c0_i32 = arith.constant 0 : i32
    %c0_i32_0 = arith.constant 0 : i32
    return %arg0, %c0_i32 : i32, i32
  }
  func.func @transform_4(%arg0: i32) -> (i32, i32) {
    %c0_i32 = arith.constant 0 : i32
    %c0_i32_0 = arith.constant 0 : i32
    return %arg0, %c0_i32 : i32, i32
  }
}

</mosaic_0001>

<bundles_post_ra>
// kernel: _combine_pallas.1
= control target key start
LH: loop header
LB: loop body
LE: loop exit
PB: predicated region body
PF: predicated region fallthrough
CT: control target
= control target key end

     0   :  { %s88_s0 = inlined_call_operand.<no memory space> [shape: f32[1], index: 0, kind: input, shape index: {}]   ;;  %s89_s1 = inlined_call_operand.<no memory space> [shape: f32[1], index: 1, kind: input, shape index: {}]   ;;  %s90_s2 = inlined_call_operand.vmem [shape: f32[16,128], index: 2, kind: input, shape index: {}]   ;;  %s91_s3 = inlined_call_operand.vmem [shape: f32[16,128], index: 3, kind: input, shape index: {}]   ;;  %s92_s4 = inlined_call_operand.vmem [shape: f32[16,128], index: 4, kind: output, shape index: {}]  }
   0x1   :  { %v21_v0 = vld [vmem:[%s90_s2] sm:$0xff]  ;;  %v23_v1 = vstv %s88_s0  ;;  %v28_v3 = vstv %s89_s1  ;;  %v22_v6 = vld [vmem:[%s90_s2 + $0x8] sm:$0xff] }
   0x2   :  { %v26_v2 = vld [vmem:[%s91_s3] sm:$0xff]  ;;  %v24_v4 = vmul.f32 %v23_v1, %v21_v0  ;;  %v27_v7 = vld [vmem:[%s91_s3 + $0x8] sm:$0xff]  ;;  %v25_v8 = vmul.f32 %v23_v1, %v22_v6 }
   0x3   :  { %v29_v5 = vmul.f32 %v28_v3, %v26_v2  ;;  %v30_v9 = vmul.f32 %v28_v3, %v27_v7 }
   0x5   :  { %v31_v10 = vadd.f32 %v29_v5, %v24_v4  ;;  %v32_v11 = vadd.f32 %v30_v9, %v25_v8 }
   0x7   :  { %33 = vst [vmem:[%s92_s4] sm:$0xff] %v31_v10  ;;  %34 = vst [vmem:[%s92_s4 + $0x8] sm:$0xff] %v32_v11 }

</bundles_post_ra>
